<compile_context>
chip_gen: v7x
topology: tpu7x:2x2x1
jax: 0.10.0
libtpu: 0.0.40
codegen_flags: <defaults>
</compile_context>

<pallas_src>
import jax
import jax.numpy as jnp
from jax.experimental import pallas as pl
from jax.experimental.pallas import tpu as pltpu


def _deconv2x2_add_kernel(x_ref, w_ref, b_ref, s_ref, o_ref):
    """One row-block of ConvTranspose2d(k=2, s=2) + bias + skip.

    x_ref: (tr*W, Cin)           MXU operand (bf16), pixels of `tr` input rows
    w_ref: (2, Cin, 2*Cout)      weight; axis0 = kh, columns = (kw, cout)
    b_ref: (1, 2*Cout)           bias tiled over kw (f32)
    s_ref: (tr, 2, W, 2*Cout)    skip, free NHWC view (f32)
    o_ref: (tr, 2, W, 2*Cout)    output, same view (f32 or bf16)
    """
    tr = o_ref.shape[0]
    W = o_ref.shape[2]
    two_cout = o_ref.shape[3]

    x = x_ref[...]          # (tr*W, Cin)
    bias = b_ref[...]       # (1, 2*Cout)

    for kh in range(2):     # static unroll: two MXU matmuls per block
        y = jnp.dot(x, w_ref[kh], preferred_element_type=jnp.float32)
        y = y + bias                               # (tr*W, 2*Cout), f32
        y = y.reshape(tr, W, two_cout)             # split leading dim only
        o_ref[:, kh, :, :] = (y + s_ref[:, kh, :, :]).astype(o_ref.dtype)


def deconv2x2_s2_add_nhwc(x, weight, bias, skip, *,
                          out_dtype=jnp.float32,
                          compute_dtype=jnp.bfloat16,
                          block_bytes=6 * 1024 * 1024):
    """ConvTranspose2d(kernel=2, stride=2)(x) + skip, channels-last.

    x:      (N, H, W, Cin)     NHWC
    weight: (Cin, Cout, 2, 2)  PyTorch ConvTranspose2d layout
    bias:   (Cout,)
    skip:   (N, 2H, 2W, Cout)  NHWC
    returns (N, 2H, 2W, Cout)  NHWC, dtype `out_dtype`
    """
    N, H, W, Cin = x.shape
    Cout = weight.shape[1]
    two_cout = 2 * Cout
    R = N * H            # input feature-map rows across the batch
    M = R * W            # input pixels

    # ---- free views (no HBM data movement) --------------------------------
    # pixels-major matmul operand, cast to bf16 for MXU + halved DMA bytes
    x_flat = x.reshape(M, Cin).astype(compute_dtype)
    # (row, kh, w, (kw, cout)) is exactly NHWC memory order of the output grid
    skip_v = skip.reshape(R, 2, W, two_cout)

    # ---- tiny parameter re-layouts ----------------------------------------
    # weight -> (kh, Cin, (kw, cout));  bias tiled over kw
    w_r = jnp.transpose(weight, (2, 0, 3, 1)).reshape(2, Cin, two_cout)
    w_r = w_r.astype(compute_dtype)
    b_row = jnp.tile(bias.astype(jnp.float32), 2).reshape(1, two_cout)

    # ---- row-block size from a VMEM byte budget ---------------------------
    x_row_bytes = W * Cin * jnp.dtype(compute_dtype).itemsize
    so_row_bytes = 4 * W * Cout * (skip.dtype.itemsize
                                   + jnp.dtype(out_dtype).itemsize)
    per_row = x_row_bytes + so_row_bytes
    tr = max(8, min(R, block_bytes // max(per_row, 1)))
    if R >= 16:                       # keep >= 2 grid steps (pipeline / 2 TCs)
        tr = min(tr, (R + 1) // 2)
    tr = max(8, (tr // 8) * 8)        # multiple of 8 -> tr*W sublane aligned
    grid = (pl.cdiv(R, tr),)          # ragged tail handled by Pallas masking

    flops = 2 * M * Cin * 2 * two_cout
    bytes_accessed = (M * Cin * jnp.dtype(compute_dtype).itemsize
                      + 2 * Cin * two_cout * jnp.dtype(compute_dtype).itemsize
                      + two_cout * 4
                      + 4 * M * Cout * skip.dtype.itemsize
                      + 4 * M * Cout * jnp.dtype(out_dtype).itemsize)

    out_v = pl.pallas_call(
        _deconv2x2_add_kernel,
        out_shape=jax.ShapeDtypeStruct((R, 2, W, two_cout), out_dtype),
        grid=grid,
        in_specs=[
            pl.BlockSpec((tr * W, Cin), lambda i: (i, 0)),
            # weight/bias: constant index map -> fetched once, stays resident.
            # (For very large Cin*Cout on v7x, pipeline_mode=pl.Buffered(1)
            #  would drop the unused second buffer; not needed at these sizes.)
            pl.BlockSpec((2, Cin, two_cout), lambda i: (0, 0, 0)),
            pl.BlockSpec((1, two_cout), lambda i: (0, 0)),
            pl.BlockSpec((tr, 2, W, two_cout), lambda i: (i, 0, 0, 0)),
        ],
        out_specs=pl.BlockSpec((tr, 2, W, two_cout), lambda i: (i, 0, 0, 0)),
        compiler_params=pltpu.CompilerParams(
            dimension_semantics=("parallel",),
            vmem_limit_bytes=48 * 1024 * 1024,
        ),
        cost_estimate=pl.CostEstimate(
            flops=flops, transcendentals=0, bytes_accessed=bytes_accessed),
    )(x_flat, w_r, b_row, skip_v)

    return out_v.reshape(N, 2 * H, 2 * W, Cout)


def yolo_v10_fpn_forward_nhwc(params, x3, x2, x1):
    """u1 = up1(x3) + x2 ; u2 = up2(u1) + x1 ; all NHWC."""
    # Intermediate stays channels-last and bf16: it feeds straight into the
    # second deconv's MXU operand with no layout copy and no convert pass.
    u1 = deconv2x2_s2_add_nhwc(x3, params["w1"], params["b1"], x2,
                               out_dtype=jnp.bfloat16)
    u2 = deconv2x2_s2_add_nhwc(u1, params["w2"], params["b2"], x1,
                               out_dtype=jnp.float32)
    return u2


@jax.jit
def yolo_v10_fpn_forward(params, x3, x2, x1):
    """NCHW wrapper matching the PyTorch module interface."""
    x3 = jnp.transpose(x3, (0, 2, 3, 1))
    x2 = jnp.transpose(x2, (0, 2, 3, 1))
    x1 = jnp.transpose(x1, (0, 2, 3, 1))
    u2 = yolo_v10_fpn_forward_nhwc(params, x3, x2, x1)
    return jnp.transpose(u2, (0, 3, 1, 2))


def _ref_deconv_add(x, weight, bias, skip):
    """Pure fp32 JAX reference (independent einsum path), NCHW."""
    N, Cin, H, W = x.shape
    Cout = weight.shape[1]
    t = jnp.einsum("nchw,cokl->nohkwl", x, weight)     # (N, Cout, H, 2, W, 2)
    up = t.reshape(N, Cout, 2 * H, 2 * W) + bias.reshape(1, Cout, 1, 1)
    return up + skip


def _init_params(key, c3, c2, c1):
    k1, k2, k3, k4 = jax.random.split(key, 4)
    s1 = 1.0 / jnp.sqrt(c3 * 2.0 * 2.0)
    s2 = 1.0 / jnp.sqrt(c2 * 2.0 * 2.0)
    return {
        "w1": jax.random.uniform(k1, (c3, c2, 2, 2), jnp.float32, -s1, s1),
        "b1": jax.random.uniform(k2, (c2,), jnp.float32, -s1, s1),
        "w2": jax.random.uniform(k3, (c2, c1, 2, 2), jnp.float32, -s2, s2),
        "b2": jax.random.uniform(k4, (c1,), jnp.float32, -s2, s2),
    }


if __name__ == "__main__":
    key = jax.random.PRNGKey(0)
    kp, kx3, kx2, kx1 = jax.random.split(key, 4)

    # Small shapes consistent with the module's forward:
    #   x3: (N, c3, H, W), x2: (N, c2, 2H, 2W), x1: (N, c1, 4H, 4W)
    N, c3, c2, c1, H = 2, 16, 8, 4, 8
    params = _init_params(kp, c3, c2, c1)
    x3 = jax.random.normal(kx3, (N, c3, H, H), jnp.float32)
    x2 = jax.random.normal(kx2, (N, c2, 2 * H, 2 * H), jnp.float32)
    x1 = jax.random.normal(kx1, (N, c1, 4 * H, 4 * H), jnp.float32)

    out = jax.block_until_ready(yolo_v10_fpn_forward(params, x3, x2, x1))

    # Independent fp32 reference of the full FPN forward.  The kernel uses
    # bf16 MXU operands and a bf16 intermediate, so tolerance is relaxed.
    u1_ref = _ref_deconv_add(x3, params["w1"], params["b1"], x2)
    u2_ref = _ref_deconv_add(u1_ref, params["w2"], params["b2"], x1)
    assert out.shape == (N, c1, 4 * H, 4 * H)
    assert jnp.allclose(out, u2_ref, atol=6e-2, rtol=5e-2), float(
        jnp.max(jnp.abs(out - u2_ref)))

    print("KERNEL_OK")
</pallas_src>

<mosaic_0001>
module attributes {stable_mosaic.version = 11 : i64} {
  func.func @_deconv2x2_add_kernel(%arg0: i32, %arg1: memref<64x16xbf16, #tpu.memory_space<vmem>>, %arg2: memref<2x16x16xbf16, #tpu.memory_space<vmem>>, %arg3: memref<1x16xf32, #tpu.memory_space<vmem>>, %arg4: memref<8x2x8x16xf32, #tpu.memory_space<vmem>>, %arg5: memref<8x2x8x16xbf16, #tpu.memory_space<vmem>>) attributes {dimension_semantics = [#tpu.dimension_semantics<parallel>], iteration_bounds = array<i64: 2>, scalar_prefetch = 0 : i64, scratch_operands = 0 : i64, tpu.core_type = #tpu.core_type<tc>, window_params = [{transform_indices = @transform_0, window_bounds = array<i64: 64, 16>}, {pipeline_mode = #tpu.pipeline_mode<synchronous>, transform_indices = @transform_1, window_bounds = array<i64: 2, 16, 16>}, {pipeline_mode = #tpu.pipeline_mode<synchronous>, transform_indices = @transform_2, window_bounds = array<i64: 1, 16>}, {transform_indices = @transform_3, window_bounds = array<i64: 8, 2, 8, 16>}, {transform_indices = @transform_4, window_bounds = array<i64: 8, 2, 8, 16>}]} {
    %c0 = arith.constant 0 : index
    %c0_0 = arith.constant 0 : index
    %0 = vector.load %arg1[%c0, %c0_0] : memref<64x16xbf16, #tpu.memory_space<vmem>>, vector<64x16xbf16>
    %c0_1 = arith.constant 0 : index
    %c0_2 = arith.constant 0 : index
    %1 = vector.load %arg3[%c0_1, %c0_2] : memref<1x16xf32, #tpu.memory_space<vmem>>, vector<1x16xf32>
    %c0_3 = arith.constant 0 : index
    %c0_4 = arith.constant 0 : index
    %c0_5 = arith.constant 0 : index
    %2 = vector.load %arg2[%c0_3, %c0_4, %c0_5] : memref<2x16x16xbf16, #tpu.memory_space<vmem>>, vector<1x16x16xbf16>
    %3 = vector.shape_cast %2 : vector<1x16x16xbf16> to vector<16x16xbf16>
    %cst = arith.constant dense<0.000000e+00> : vector<64x16xf32>
    %4 = tpu.matmul %0, %3, %cst {dimension_numbers = #tpu.dot_dimension_numbers<[1], [0], [0], [1], [0, 0, 1, 1], [], []>} : vector<64x16xbf16>, vector<16x16xbf16>, vector<64x16xf32> -> vector<64x16xf32>
    %5 = vector.broadcast %1 : vector<1x16xf32> to vector<64x16xf32>
    %6 = arith.addf %4, %5 : vector<64x16xf32>
    %7 = vector.shape_cast %6 : vector<64x16xf32> to vector<8x8x16xf32>
    %c0_6 = arith.constant 0 : index
    %c0_7 = arith.constant 0 : index
    %c0_8 = arith.constant 0 : index
    %c0_9 = arith.constant 0 : index
    %8 = vector.load %arg4[%c0_6, %c0_7, %c0_8, %c0_9] : memref<8x2x8x16xf32, #tpu.memory_space<vmem>>, vector<8x1x8x16xf32>
    %9 = vector.shape_cast %8 : vector<8x1x8x16xf32> to vector<8x8x16xf32>
    %10 = arith.addf %7, %9 : vector<8x8x16xf32>
    %11 = arith.truncf %10 : vector<8x8x16xf32> to vector<8x8x16xbf16>
    %c0_10 = arith.constant 0 : index
    %c0_11 = arith.constant 0 : index
    %c0_12 = arith.constant 0 : index
    %c0_13 = arith.constant 0 : index
    %12 = vector.load %arg5[%c0_10, %c0_11, %c0_12, %c0_13] : memref<8x2x8x16xbf16, #tpu.memory_space<vmem>>, vector<8x1x8x16xbf16>
    %13 = vector.shape_cast %12 : vector<8x1x8x16xbf16> to vector<8x8x16xbf16>
    %14 = vector.shape_cast %11 : vector<8x8x16xbf16> to vector<8x1x8x16xbf16>
    tpu.vector_store %arg5[%c0_10, %c0_11, %c0_12, %c0_13], %14 {strides = array<i32>} : memref<8x2x8x16xbf16, #tpu.memory_space<vmem>>, vector<8x1x8x16xbf16>,
    %c1 = arith.constant 1 : index
    %c0_14 = arith.constant 0 : index
    %c0_15 = arith.constant 0 : index
    %15 = vector.load %arg2[%c1, %c0_14, %c0_15] : memref<2x16x16xbf16, #tpu.memory_space<vmem>>, vector<1x16x16xbf16>
    %16 = vector.shape_cast %15 : vector<1x16x16xbf16> to vector<16x16xbf16>
    %cst_16 = arith.constant dense<0.000000e+00> : vector<64x16xf32>
    %17 = tpu.matmul %0, %16, %cst_16 {dimension_numbers = #tpu.dot_dimension_numbers<[1], [0], [0], [1], [0, 0, 1, 1], [], []>} : vector<64x16xbf16>, vector<16x16xbf16>, vector<64x16xf32> -> vector<64x16xf32>
    %18 = vector.broadcast %1 : vector<1x16xf32> to vector<64x16xf32>
    %19 = arith.addf %17, %18 : vector<64x16xf32>
    %20 = vector.shape_cast %19 : vector<64x16xf32> to vector<8x8x16xf32>
    %c0_17 = arith.constant 0 : index
    %c1_18 = arith.constant 1 : index
    %c0_19 = arith.constant 0 : index
    %c0_20 = arith.constant 0 : index
    %21 = vector.load %arg4[%c0_17, %c1_18, %c0_19, %c0_20] : memref<8x2x8x16xf32, #tpu.memory_space<vmem>>, vector<8x1x8x16xf32>
    %22 = vector.shape_cast %21 : vector<8x1x8x16xf32> to vector<8x8x16xf32>
    %23 = arith.addf %20, %22 : vector<8x8x16xf32>
    %24 = arith.truncf %23 : vector<8x8x16xf32> to vector<8x8x16xbf16>
    %c0_21 = arith.constant 0 : index
    %c1_22 = arith.constant 1 : index
    %c0_23 = arith.constant 0 : index
    %c0_24 = arith.constant 0 : index
    %25 = vector.load %arg5[%c0_21, %c1_22, %c0_23, %c0_24] : memref<8x2x8x16xbf16, #tpu.memory_space<vmem>>, vector<8x1x8x16xbf16>
    %26 = vector.shape_cast %25 : vector<8x1x8x16xbf16> to vector<8x8x16xbf16>
    %27 = vector.shape_cast %24 : vector<8x8x16xbf16> to vector<8x1x8x16xbf16>
    tpu.vector_store %arg5[%c0_21, %c1_22, %c0_23, %c0_24], %27 {strides = array<i32>} : memref<8x2x8x16xbf16, #tpu.memory_space<vmem>>, vector<8x1x8x16xbf16>,
    return
  }
  func.func @transform_0(%arg0: i32) -> (i32, i32) {
    %c0_i32 = arith.constant 0 : i32
    %c0_i32_0 = arith.constant 0 : i32
    return %arg0, %c0_i32 : i32, i32
  }
  func.func @transform_1(%arg0: i32) -> (i32, i32, i32) {
    %c0_i32 = arith.constant 0 : i32
    %c0_i32_0 = arith.constant 0 : i32
    %c0_i32_1 = arith.constant 0 : i32
    %c0_i32_2 = arith.constant 0 : i32
    return %c0_i32, %c0_i32_0, %c0_i32_1 : i32, i32, i32
  }
  func.func @transform_2(%arg0: i32) -> (i32, i32) {
    %c0_i32 = arith.constant 0 : i32
    %c0_i32_0 = arith.constant 0 : i32
    %c0_i32_1 = arith.constant 0 : i32
    return %c0_i32, %c0_i32_0 : i32, i32
  }
  func.func @transform_3(%arg0: i32) -> (i32, i32, i32, i32) {
    %c0_i32 = arith.constant 0 : i32
    %c0_i32_0 = arith.constant 0 : i32
    %c0_i32_1 = arith.constant 0 : i32
    %c0_i32_2 = arith.constant 0 : i32
    return %arg0, %c0_i32, %c0_i32_0, %c0_i32_1 : i32, i32, i32, i32
  }
  func.func @transform_4(%arg0: i32) -> (i32, i32, i32, i32) {
    %c0_i32 = arith.constant 0 : i32
    %c0_i32_0 = arith.constant 0 : i32
    %c0_i32_1 = arith.constant 0 : i32
    %c0_i32_2 = arith.constant 0 : i32
    return %arg0, %c0_i32, %c0_i32_0, %c0_i32_1 : i32, i32, i32, i32
  }
}

module attributes {stable_mosaic.version = 11 : i64} {
  func.func @_deconv2x2_add_kernel(%arg0: i32, %arg1: memref<256x8xbf16, #tpu.memory_space<vmem>>, %arg2: memref<2x8x8xbf16, #tpu.memory_space<vmem>>, %arg3: memref<1x8xf32, #tpu.memory_space<vmem>>, %arg4: memref<16x2x16x8xf32, #tpu.memory_space<vmem>>, %arg5: memref<16x2x16x8xf32, #tpu.memory_space<vmem>>) attributes {dimension_semantics = [#tpu.dimension_semantics<parallel>], iteration_bounds = array<i64: 2>, scalar_prefetch = 0 : i64, scratch_operands = 0 : i64, tpu.core_type = #tpu.core_type<tc>, window_params = [{transform_indices = @transform_0, window_bounds = array<i64: 256, 8>}, {pipeline_mode = #tpu.pipeline_mode<synchronous>, transform_indices = @transform_1, window_bounds = array<i64: 2, 8, 8>}, {pipeline_mode = #tpu.pipeline_mode<synchronous>, transform_indices = @transform_2, window_bounds = array<i64: 1, 8>}, {transform_indices = @transform_3, window_bounds = array<i64: 16, 2, 16, 8>}, {transform_indices = @transform_4, window_bounds = array<i64: 16, 2, 16, 8>}]} {
    %c0 = arith.constant 0 : index
    %c0_0 = arith.constant 0 : index
    %0 = vector.load %arg1[%c0, %c0_0] : memref<256x8xbf16, #tpu.memory_space<vmem>>, vector<256x8xbf16>
    %c0_1 = arith.constant 0 : index
    %c0_2 = arith.constant 0 : index
    %1 = vector.load %arg3[%c0_1, %c0_2] : memref<1x8xf32, #tpu.memory_space<vmem>>, vector<1x8xf32>
    %c0_3 = arith.constant 0 : index
    %c0_4 = arith.constant 0 : index
    %c0_5 = arith.constant 0 : index
    %2 = vector.load %arg2[%c0_3, %c0_4, %c0_5] : memref<2x8x8xbf16, #tpu.memory_space<vmem>>, vector<1x8x8xbf16>
    %3 = vector.shape_cast %2 : vector<1x8x8xbf16> to vector<8x8xbf16>
    %cst = arith.constant dense<0.000000e+00> : vector<256x8xf32>
    %4 = tpu.matmul %0, %3, %cst {dimension_numbers = #tpu.dot_dimension_numbers<[1], [0], [0], [1], [0, 0, 1, 1], [], []>} : vector<256x8xbf16>, vector<8x8xbf16>, vector<256x8xf32> -> vector<256x8xf32>
    %5 = vector.broadcast %1 : vector<1x8xf32> to vector<256x8xf32>
    %6 = arith.addf %4, %5 : vector<256x8xf32>
    %7 = vector.shape_cast %6 : vector<256x8xf32> to vector<16x16x8xf32>
    %c0_6 = arith.constant 0 : index
    %c0_7 = arith.constant 0 : index
    %c0_8 = arith.constant 0 : index
    %c0_9 = arith.constant 0 : index
    %8 = vector.load %arg4[%c0_6, %c0_7, %c0_8, %c0_9] : memref<16x2x16x8xf32, #tpu.memory_space<vmem>>, vector<16x1x16x8xf32>
    %9 = vector.shape_cast %8 : vector<16x1x16x8xf32> to vector<16x16x8xf32>
    %10 = arith.addf %7, %9 : vector<16x16x8xf32>
    %c0_10 = arith.constant 0 : index
    %c0_11 = arith.constant 0 : index
    %c0_12 = arith.constant 0 : index
    %c0_13 = arith.constant 0 : index
    %11 = vector.load %arg5[%c0_10, %c0_11, %c0_12, %c0_13] : memref<16x2x16x8xf32, #tpu.memory_space<vmem>>, vector<16x1x16x8xf32>
    %12 = vector.shape_cast %11 : vector<16x1x16x8xf32> to vector<16x16x8xf32>
    %13 = vector.shape_cast %10 : vector<16x16x8xf32> to vector<16x1x16x8xf32>
    tpu.vector_store %arg5[%c0_10, %c0_11, %c0_12, %c0_13], %13 {strides = array<i32>} : memref<16x2x16x8xf32, #tpu.memory_space<vmem>>, vector<16x1x16x8xf32>,
    %c1 = arith.constant 1 : index
    %c0_14 = arith.constant 0 : index
    %c0_15 = arith.constant 0 : index
    %14 = vector.load %arg2[%c1, %c0_14, %c0_15] : memref<2x8x8xbf16, #tpu.memory_space<vmem>>, vector<1x8x8xbf16>
    %15 = vector.shape_cast %14 : vector<1x8x8xbf16> to vector<8x8xbf16>
    %cst_16 = arith.constant dense<0.000000e+00> : vector<256x8xf32>
    %16 = tpu.matmul %0, %15, %cst_16 {dimension_numbers = #tpu.dot_dimension_numbers<[1], [0], [0], [1], [0, 0, 1, 1], [], []>} : vector<256x8xbf16>, vector<8x8xbf16>, vector<256x8xf32> -> vector<256x8xf32>
    %17 = vector.broadcast %1 : vector<1x8xf32> to vector<256x8xf32>
    %18 = arith.addf %16, %17 : vector<256x8xf32>
    %19 = vector.shape_cast %18 : vector<256x8xf32> to vector<16x16x8xf32>
    %c0_17 = arith.constant 0 : index
    %c1_18 = arith.constant 1 : index
    %c0_19 = arith.constant 0 : index
    %c0_20 = arith.constant 0 : index
    %20 = vector.load %arg4[%c0_17, %c1_18, %c0_19, %c0_20] : memref<16x2x16x8xf32, #tpu.memory_space<vmem>>, vector<16x1x16x8xf32>
    %21 = vector.shape_cast %20 : vector<16x1x16x8xf32> to vector<16x16x8xf32>
    %22 = arith.addf %19, %21 : vector<16x16x8xf32>
    %c0_21 = arith.constant 0 : index
    %c1_22 = arith.constant 1 : index
    %c0_23 = arith.constant 0 : index
    %c0_24 = arith.constant 0 : index
    %23 = vector.load %arg5[%c0_21, %c1_22, %c0_23, %c0_24] : memref<16x2x16x8xf32, #tpu.memory_space<vmem>>, vector<16x1x16x8xf32>
    %24 = vector.shape_cast %23 : vector<16x1x16x8xf32> to vector<16x16x8xf32>
    %25 = vector.shape_cast %22 : vector<16x16x8xf32> to vector<16x1x16x8xf32>
    tpu.vector_store %arg5[%c0_21, %c1_22, %c0_23, %c0_24], %25 {strides = array<i32>} : memref<16x2x16x8xf32, #tpu.memory_space<vmem>>, vector<16x1x16x8xf32>,
    return
  }
  func.func @transform_0(%arg0: i32) -> (i32, i32) {
    %c0_i32 = arith.constant 0 : i32
    %c0_i32_0 = arith.constant 0 : i32
    return %arg0, %c0_i32 : i32, i32
  }
  func.func @transform_1(%arg0: i32) -> (i32, i32, i32) {
    %c0_i32 = arith.constant 0 : i32
    %c0_i32_0 = arith.constant 0 : i32
    %c0_i32_1 = arith.constant 0 : i32
    %c0_i32_2 = arith.constant 0 : i32
    return %c0_i32, %c0_i32_0, %c0_i32_1 : i32, i32, i32
  }
  func.func @transform_2(%arg0: i32) -> (i32, i32) {
    %c0_i32 = arith.constant 0 : i32
    %c0_i32_0 = arith.constant 0 : i32
    %c0_i32_1 = arith.constant 0 : i32
    return %c0_i32, %c0_i32_0 : i32, i32
  }
  func.func @transform_3(%arg0: i32) -> (i32, i32, i32, i32) {
    %c0_i32 = arith.constant 0 : i32
    %c0_i32_0 = arith.constant 0 : i32
    %c0_i32_1 = arith.constant 0 : i32
    %c0_i32_2 = arith.constant 0 : i32
    return %arg0, %c0_i32, %c0_i32_0, %c0_i32_1 : i32, i32, i32, i32
  }
  func.func @transform_4(%arg0: i32) -> (i32, i32, i32, i32) {
    %c0_i32 = arith.constant 0 : i32
    %c0_i32_0 = arith.constant 0 : i32
    %c0_i32_1 = arith.constant 0 : i32
    %c0_i32_2 = arith.constant 0 : i32
    return %arg0, %c0_i32, %c0_i32_0, %c0_i32_1 : i32, i32, i32, i32
  }
}

</mosaic_0001>

<bundles_post_ra>
// kernel: tile.13
= control target key start
LH: loop header
LB: loop body
LE: loop exit
PB: predicated region body
PF: predicated region fallthrough
CT: control target
= control target key end

     0   :  { %s22_s0 = inlined_call_operand.vmem [shape: f32[8], index: 0, kind: input, shape index: {}]   ;;  %s23_s1 = inlined_call_operand.vmem [shape: f32[2,8], index: 1, kind: output, shape index: {}]  }
   0x1   :  { %v4_v0 = vld [vmem:[%s22_s0] ss:$0 sm:$0xff] }
   0x2   :  { %5 = vst [vmem:[%s23_s1] sm:$0x3] %v4_v0 }

// kernel: tile.14
= control target key start
LH: loop header
LB: loop body
LE: loop exit
PB: predicated region body
PF: predicated region fallthrough
CT: control target
= control target key end

     0   :  { %vm7_vm0 = vcmask 64512   ;;  %vm13_vm1 = vcmask 130112   ;;  %s39_s0 = inlined_call_operand.vmem [shape: f32[2,8], index: 0, kind: input, shape index: {}]   ;;  %s40_s1 = inlined_call_operand.vmem [shape: f32[1,16], index: 1, kind: output, shape index: {}]  }
   0x1   :  { %v4_v0 = vld [vmem:[%s39_s0] sm:$0x3]  ;;  %s22_s0 = smov 8  }
   0x2   :  { %5 = vst [vmem:[#allocation1] sm:$0x3] %v4_v0 }
   0x9   :  { %v10_v1 = vld [vmem:[#allocation1 + $0x1] sm:$0x1]   ;;  %v6_v2 = vld [vmem:[#allocation1] sm:$0x1]  }
   0xa   :  { %11 = vrot.lane.b32.xlu0 %v10_v1, %s22_s0  ;;  %8 = vst.msk [vmem:[#allocation0] sm:$0x1] %vm7_vm0, %v6_v2  }
  0x7c   :  { %v12_v3 = vpop.permute.xlu0 %11  }
  0x7d   :  { %14 = vst.msk [vmem:[#allocation0] sm:$0x1] %vm13_vm1, %v12_v3  }
  0x84   :  { %v18_v4 = vld [vmem:[#allocation0] sm:$0x1] }
  0x85   :  { %20 = vst [vmem:[%s40_s1] sm:$0x1] %v18_v4 }

// kernel: tile.18
= control target key start
LH: loop header
LB: loop body
LE: loop exit
PB: predicated region body
PF: predicated region fallthrough
CT: control target
= control target key end

     0   :  { %s22_s0 = inlined_call_operand.vmem [shape: f32[4], index: 0, kind: input, shape index: {}]   ;;  %s23_s1 = inlined_call_operand.vmem [shape: f32[2,4], index: 1, kind: output, shape index: {}]  }
   0x1   :  { %v4_v0 = vld [vmem:[%s22_s0] ss:$0 sm:$0xff] }
   0x2   :  { %5 = vst [vmem:[%s23_s1] sm:$0x3] %v4_v0 }

// kernel: tile.19
= control target key start
LH: loop header
LB: loop body
LE: loop exit
PB: predicated region body
PF: predicated region fallthrough
CT: control target
= control target key end

     0   :  { %vm7_vm0 = vcmask 31744   ;;  %vm13_vm1 = vcmask 64544   ;;  %s39_s0 = inlined_call_operand.vmem [shape: f32[2,4], index: 0, kind: input, shape index: {}]   ;;  %s40_s1 = inlined_call_operand.vmem [shape: f32[1,8], index: 1, kind: output, shape index: {}]  }
   0x1   :  { %v4_v0 = vld [vmem:[%s39_s0] sm:$0x3]  ;;  %s22_s0 = smov 4  }
   0x2   :  { %5 = vst [vmem:[#allocation1] sm:$0x3] %v4_v0 }
   0x9   :  { %v10_v1 = vld [vmem:[#allocation1 + $0x1] sm:$0x1]   ;;  %v6_v2 = vld [vmem:[#allocation1] sm:$0x1]  }
   0xa   :  { %11 = vrot.lane.b32.xlu0 %v10_v1, %s22_s0  ;;  %8 = vst.msk [vmem:[#allocation0] sm:$0x1] %vm7_vm0, %v6_v2  }
  0x7c   :  { %v12_v3 = vpop.permute.xlu0 %11  }
  0x7d   :  { %14 = vst.msk [vmem:[#allocation0] sm:$0x1] %vm13_vm1, %v12_v3  }
  0x84   :  { %v18_v4 = vld [vmem:[#allocation0] sm:$0x1] }
  0x85   :  { %20 = vst [vmem:[%s40_s1] sm:$0x1] %v18_v4 }

// kernel: yolo_v10_fpn_forward.2
= control target key start
LH: loop header
LB: loop body
LE: loop exit
PB: predicated region body
PF: predicated region fallthrough
CT: control target
= control target key end

     0   :  { %s688_s15 = smov 0   ;;  %s792_s0 = inlined_call_operand.vmem [shape: bf16[128,16], index: 0, kind: input, shape index: {}]   ;;  %s793_s1 = inlined_call_operand.vmem [shape: bf16[2,16,16], index: 1, kind: input, shape index: {}]   ;;  %s794_s2 = inlined_call_operand.vmem [shape: f32[1,16], index: 2, kind: input, shape index: {}]   ;;  %s795_s3 = inlined_call_operand.vmem [shape: f32[16,2,8,16], index: 3, kind: input, shape index: {}]   ;;  %s796_s4 = inlined_call_operand.vmem [shape: bf16[16,2,8,16], index: 4, kind: output, shape index: {}]  }
   0x1 LB: > { %s561_s16 = sadd.s32 4294967295, %s661_s15   ;;  %p565_p0 = scmp.ge.s32.totalorder %s661_s15, 1  ;;  %s661_s15 = sphi %s688_s15, %s14_s15  }
   0x2   : > { %p175_p1 = scmp.lt.s32.totalorder %s661_s15, 3 }
   0x4   : > { %p176_p2 = pnand %p565_p0, %p175_p1 }
   0x5   : > { %v649_v0 = vld [vmem:[%s793_s1] sm:$0xff] (!%p176_p2)   ;;  %s566_s19 = sshll.u32 (!%p176_p2), %s561_s16, 3  ;;  %v650_v1 = vld [vmem:[%s793_s1 + $0x8] sm:$0xff] (!%p176_p2)   ;;  %vm272_vm0 = vcmask (!%p176_p2), 130048   ;;  %vm374_vm1 = vcmask (!%p176_p2), 125952  }
   0x6   : > { %179 = sbr.rel (%p176_p2) target bundleno = 248 (0xf8), region = 36  ;;  %p209_p3 = scmp.lt.s32.totalorder (!%p176_p2), %s566_s19, 15  ;;  %621 = vmatprep.subr.bf16.mxu0 (!%p176_p2), %v649_v0  ;;  %631 = vmatprep.subr.bf16.mxu1 (!%p176_p2), %v650_v1  ;;  %v717_v6 = vld [vmem:[%s794_s2] ss:$0 sm:$0xff] (!%p176_p2) }
   0x7   : > { %622 = vmatpush3.bf16.msra.mxu0 (!%p176_p2), %v649_v0  ;;  %632 = vmatpush3.bf16.msra.mxu1 (!%p176_p2), %v650_v1 }
   0xd   : > { %s798_s19 = smov (!%p209_p3, %s566_s19), 15 }
   0xe   : > { %s567_s22 = sshll.u32 %s798_s19, 2  ;;  %s609_s26 = sshll.u32 %s798_s19, 4 }
   0xf   : > { %s212_s25 = scalar_lea.vmem %s792_s0, %s567_s22  ;;  %s712_s29 = scalar_lea.vmem %s795_s3, %s609_s26 }
  0x10   : > { %v651_v2 = vld [vmem:[%s212_s25] sm:$0xff]   ;;  %v652_v3 = vld [vmem:[%s212_s25 + $0x8] sm:$0xff]   ;;  %v653_v4 = vld [vmem:[%s212_s25 + $0x10] sm:$0xff]   ;;  %s610_s6 = sshll.u32 %s798_s19, 3 }
  0x11   : > { %623 = vmatprep.mubr.msk.bf16.mxu0 %vm272_vm0, %v651_v2  ;;  %633 = vmatprep.mubr.msk.bf16.mxu1 %vm272_vm0, %v651_v2  ;;  %v654_v5 = vld [vmem:[%s212_s25 + $0x18] sm:$0xff]   ;;  %v352_v8 = vld [vmem:[%s712_s29 + $0x20] sm:$0xff]  ;;  %v593_v10 = vld [vmem:[%s712_s29 + $0x28] sm:$0xff]  ;;  %s737_s9 = scalar_lea.vmem %s796_s4, %s610_s6 }
  0x12   : > { %624 = vmatmul.mubr.msk.bf16.vlgmr.msra.gmra.mrb[0].mxu0 %vm272_vm0, %v652_v3  ;;  %634 = vmatmul.mubr.msk.bf16.vlgmr.msra.gmra.mrb[0].mxu1 %vm272_vm0, %v652_v3  ;;  %v350_v14 = vld [vmem:[%s712_s29] sm:$0xff]  ;;  %v591_v16 = vld [vmem:[%s712_s29 + $0x8] sm:$0xff]  ;;  %v353_v20 = vld [vmem:[%s712_s29 + $0x30] sm:$0xff] }
  0x13   : > { %627 = vmatprep.mubr.msk.bf16.mxu0 %vm272_vm0, %v653_v4  ;;  %637 = vmatprep.mubr.msk.bf16.mxu1 %vm272_vm0, %v653_v4  ;;  %v594_v22 = vld [vmem:[%s712_s29 + $0x38] sm:$0xff]  ;;  %v351_v28 = vld [vmem:[%s712_s29 + $0x10] sm:$0xff]  ;;  %v356_v48 = vld [vmem:[%s712_s29 + $0x60] sm:$0xff] }
  0x14   : > { %v592_v30 = vld [vmem:[%s712_s29 + $0x18] sm:$0xff]  ;;  %v597_v50 = vld [vmem:[%s712_s29 + $0x68] sm:$0xff]  ;;  %v354_v54 = vld [vmem:[%s712_s29 + $0x40] sm:$0xff] }
  0x15   : > { %v595_v56 = vld [vmem:[%s712_s29 + $0x48] sm:$0xff]  ;;  %v357_v60 = vld [vmem:[%s712_s29 + $0x70] sm:$0xff]  ;;  %v598_v62 = vld [vmem:[%s712_s29 + $0x78] sm:$0xff] }
  0x16   : > { %v355_v4 = vld [vmem:[%s712_s29 + $0x50] sm:$0xff] }
  0x1a   : > { %628 = vmatmul.mubr.msk.bf16.gmra.mrb[4].mxu0 %vm272_vm0, %v654_v5  ;;  %638 = vmatmul.mubr.msk.bf16.gmra.mrb[4].mxu1 %vm272_vm0, %v654_v5 }
  0xe5   : > { %v625_v7 = vpop.f32.mrb[0].mxu0  ;;  %v635_v9 = vpop.f32.mrb[0].mxu1 }
  0xe6   : > { %v328_v11 = vadd.f32 %v625_v7, %v717_v6  ;;  %v435_v12 = vadd.f32 %v635_v9, %v717_v6  ;;  %v319_v13 = vpop.f32.mrb[1].mxu0  ;;  %v426_v15 = vpop.f32.mrb[1].mxu1  ;;  %v596_v7 = vld [vmem:[%s712_s29 + $0x58] sm:$0xff] }
  0xe7   : > { %v320_v17 = vadd.f32 %v717_v6, %v319_v13  ;;  %v427_v18 = vadd.f32 %v717_v6, %v426_v15  ;;  %v626_v19 = vpop.f32.mrb[2].mxu0  ;;  %v636_v21 = vpop.f32.mrb[2].mxu1 }
  0xe8   : > { %v360_v23 = vadd.f32 %v352_v8, %v328_v11  ;;  %v468_v24 = vadd.f32 %v593_v10, %v435_v12  ;;  %v331_v25 = vadd.f32 %v626_v19, %v717_v6  ;;  %v438_v26 = vadd.f32 %v636_v21, %v717_v6  ;;  %v322_v27 = vpop.f32.mrb[3].mxu0  ;;  %v429_v29 = vpop.f32.mrb[3].mxu1 }
  0xe9   : > { %v358_v31 = vadd.f32 %v350_v14, %v320_v17  ;;  %v466_v32 = vadd.f32 %v591_v16, %v427_v18  ;;  %v323_v33 = vadd.f32 %v717_v6, %v322_v27  ;;  %v430_v34 = vadd.f32 %v717_v6, %v429_v29 }
  0xea   : > { %v368_v35 = vpack.c.bf16 %v360_v23, %v360_v23  ;;  %v476_v36 = vpack.c.bf16 %v468_v24, %v468_v24  ;;  %v361_v37 = vadd.f32 %v353_v20, %v331_v25  ;;  %v469_v38 = vadd.f32 %v594_v22, %v438_v26 }
  0xeb   : > { %v366_v39 = vpack.c.bf16 %v358_v31, %v358_v31  ;;  %v474_v40 = vpack.c.bf16 %v466_v32, %v466_v32  ;;  %v359_v41 = vadd.f32 %v351_v28, %v323_v33  ;;  %v467_v42 = vadd.f32 %v592_v30, %v430_v34 }
  0xec   : > { %377 = vst.msk [vmem:[%s737_s9 + $0x10] sm:$0xf] %vm374_vm1, %v368_v35  ;;  %601 = vst.msk [vmem:[%s737_s9 + $0x14] sm:$0xf] %vm374_vm1, %v476_v36  ;;  %v369_v43 = vpack.c.bf16 %v361_v37, %v361_v37  ;;  %v477_v44 = vpack.c.bf16 %v469_v38, %v469_v38 }
  0xed   : > { %375 = vst.msk [vmem:[%s737_s9] sm:$0xf] %vm374_vm1, %v366_v39  ;;  %599 = vst.msk [vmem:[%s737_s9 + $0x4] sm:$0xf] %vm374_vm1, %v474_v40  ;;  %v367_v45 = vpack.c.bf16 %v359_v41, %v359_v41  ;;  %v475_v46 = vpack.c.bf16 %v467_v42, %v467_v42  ;;  %v629_v47 = vpop.f32.mrb[4].mxu0  ;;  %v639_v49 = vpop.f32.mrb[4].mxu1 }
  0xee   : > { %378 = vst.msk [vmem:[%s737_s9 + $0x18] sm:$0xf] %vm374_vm1, %v369_v43  ;;  %602 = vst.msk [vmem:[%s737_s9 + $0x1c] sm:$0xf] %vm374_vm1, %v477_v44  ;;  %v344_v51 = vadd.f32 %v629_v47, %v717_v6  ;;  %v451_v52 = vadd.f32 %v639_v49, %v717_v6  ;;  %v335_v53 = vpop.f32.mrb[5].mxu0  ;;  %v442_v55 = vpop.f32.mrb[5].mxu1 }
  0xef   : > { %376 = vst.msk [vmem:[%s737_s9 + $0x8] sm:$0xf] %vm374_vm1, %v367_v45  ;;  %600 = vst.msk [vmem:[%s737_s9 + $0xc] sm:$0xf] %vm374_vm1, %v475_v46  ;;  %v336_v57 = vadd.f32 %v717_v6, %v335_v53  ;;  %v443_v58 = vadd.f32 %v717_v6, %v442_v55  ;;  %v630_v59 = vpop.f32.mrb[6].mxu0  ;;  %v640_v61 = vpop.f32.mrb[6].mxu1 }
  0xf0   : > { %v364_v63 = vadd.f32 %v356_v48, %v344_v51  ;;  %v472_v0 = vadd.f32 %v597_v50, %v451_v52  ;;  %v347_v1 = vadd.f32 %v630_v59, %v717_v6  ;;  %v454_v2 = vadd.f32 %v640_v61, %v717_v6  ;;  %v338_v3 = vpop.f32.mrb[7].mxu0  ;;  %v445_v5 = vpop.f32.mrb[7].mxu1 }
  0xf1   : > { %v362_v8 = vadd.f32 %v354_v54, %v336_v57  ;;  %v470_v9 = vadd.f32 %v595_v56, %v443_v58  ;;  %v339_v10 = vadd.f32 %v717_v6, %v338_v3  ;;  %v446_v11 = vadd.f32 %v717_v6, %v445_v5 }
  0xf2   : > { %v372_v12 = vpack.c.bf16 %v364_v63, %v364_v63  ;;  %v480_v13 = vpack.c.bf16 %v472_v0, %v472_v0  ;;  %v365_v14 = vadd.f32 %v357_v60, %v347_v1  ;;  %v473_v15 = vadd.f32 %v598_v62, %v454_v2 }
  0xf3   : > { %v370_v16 = vpack.c.bf16 %v362_v8, %v362_v8  ;;  %v478_v17 = vpack.c.bf16 %v470_v9, %v470_v9  ;;  %v363_v18 = vadd.f32 %v355_v4, %v339_v10  ;;  %v471_v19 = vadd.f32 %v596_v7, %v446_v11 }
  0xf4   : > { %381 = vst.msk [vmem:[%s737_s9 + $0x30] sm:$0xf] %vm374_vm1, %v372_v12  ;;  %605 = vst.msk [vmem:[%s737_s9 + $0x34] sm:$0xf] %vm374_vm1, %v480_v13  ;;  %v373_v20 = vpack.c.bf16 %v365_v14, %v365_v14  ;;  %v481_v21 = vpack.c.bf16 %v473_v15, %v473_v15 }
  0xf5   : > { %379 = vst.msk [vmem:[%s737_s9 + $0x20] sm:$0xf] %vm374_vm1, %v370_v16  ;;  %603 = vst.msk [vmem:[%s737_s9 + $0x24] sm:$0xf] %vm374_vm1, %v478_v17  ;;  %v371_v6 = vpack.c.bf16 %v363_v18, %v363_v18  ;;  %v479_v22 = vpack.c.bf16 %v471_v19, %v471_v19 }
  0xf6   : > { %382 = vst.msk [vmem:[%s737_s9 + $0x38] sm:$0xf] %vm374_vm1, %v373_v20  ;;  %606 = vst.msk [vmem:[%s737_s9 + $0x3c] sm:$0xf] %vm374_vm1, %v481_v21 }
  0xf7   : > { %380 = vst.msk [vmem:[%s737_s9 + $0x28] sm:$0xf] %vm374_vm1, %v371_v6  ;;  %604 = vst.msk [vmem:[%s737_s9 + $0x2c] sm:$0xf] %vm374_vm1, %v479_v22 }
  0xf8 PF: > { %s14_s15 = sadd.s32 1, %s661_s15  }
  0xf9   : > { %p11_p4 = scmp.ge.s32.totalorder %s14_s15, 4  }
  0xfb   :  { %13 = sbr.rel (!%p11_p4) target bundleno = 1 (0x1), region = 72 }

// kernel: yolo_v10_fpn_forward.3
= control target key start
LH: loop header
LB: loop body
LE: loop exit
PB: predicated region body
PF: predicated region fallthrough
CT: control target
= control target key end

     0   :  { %s1285_s15 = smov 0   ;;  %s1630_s0 = inlined_call_operand.vmem [shape: bf16[512,8], index: 0, kind: input, shape index: {}]   ;;  %s1631_s1 = inlined_call_operand.vmem [shape: bf16[2,8,8], index: 1, kind: input, shape index: {}]   ;;  %s1632_s2 = inlined_call_operand.vmem [shape: f32[1,8], index: 2, kind: input, shape index: {}]   ;;  %s1633_s3 = inlined_call_operand.vmem [shape: f32[32,2,16,8], index: 3, kind: input, shape index: {}]   ;;  %s1634_s4 = inlined_call_operand.vmem [shape: f32[32,2,16,8], index: 4, kind: output, shape index: {}]  }
   0x1 LB: > { %s993_s16 = sadd.s32 4294967295, %s1258_s15   ;;  %p997_p0 = scmp.ge.s32.totalorder %s1258_s15, 1  ;;  %s1258_s15 = sphi %s1285_s15, %s14_s15  }
   0x2   : > { %p175_p1 = scmp.lt.s32.totalorder %s1258_s15, 3 }
   0x4   : > { %p176_p2 = pnand %p997_p0, %p175_p1 }
   0x5   : > { %v262_v0 = vld [vmem:[%s1631_s1] sm:$0xf] (!%p176_p2)  ;;  %vm398_vm0 = vcmask (!%p176_p2), 1043456   ;;  %v1039_v1 = vld [vmem:[%s1631_s1 + $0x4] sm:$0xf] (!%p176_p2)  ;;  %s998_s21 = sshll.u32 (!%p176_p2), %s993_s16, 5 }
   0x6   : > { %179 = sbr.rel (%p176_p2) target bundleno = 294 (0x126), region = 36  ;;  %1226 = vmatprep.subr.msk.bf16.mxu0 (!%p176_p2), %vm398_vm0, %v262_v0  ;;  %1227 = vmatprep.subr.msk.bf16.mxu1 (!%p176_p2), %vm398_vm0, %v1039_v1  ;;  %v400_v2 = vsel (!%p176_p2), %vm398_vm0, %v262_v0, 0  ;;  %v662_v3 = vsel (!%p176_p2), %vm398_vm0, %v1039_v1, 0  ;;  %p209_p3 = scmp.lt.s32.totalorder (!%p176_p2), %s998_s21, 63  ;;  %vm349_vm1 = vcmask (!%p176_p2), 64512  }
   0x7   : > { %1159 = vmatpush3.bf16.msra.mxu0 (!%p176_p2), %v400_v2  ;;  %1193 = vmatpush3.bf16.msra.mxu1 (!%p176_p2), %v662_v3  ;;  %s1000_s26 = sshll.u32 (!%p176_p2), %s993_s16, 4  ;;  %v1364_v20 = vld [vmem:[%s1632_s2] ss:$0 sm:$0xff] (!%p176_p2) }
   0x8   : > { %p215_p4 = scmp.lt.s32.totalorder (!%p176_p2), %s1000_s26, 31 }
   0xd   : > { %s1636_s21 = smov (!%p209_p3, %s998_s21), 63  ;;  %s1638_s26 = smov (!%p215_p4, %s1000_s26), 31 }
   0xe   : > { %s999_s22 = sshll.u32 %s1636_s21, 2  ;;  %s1122_s27 = sshll.u32 %s1638_s26, 5 }
   0xf   : > { %s1304_s25 = scalar_lea.vmem %s1630_s0, %s999_s22  ;;  %s1359_s30 = scalar_lea.vmem %s1633_s3, %s1122_s27 }
  0x10   : > { %v1236_v4 = vld [vmem:[%s1304_s25] sm:$0xff]   ;;  %v1237_v5 = vld [vmem:[%s1304_s25 + $0x8] sm:$0xff]   ;;  %v1238_v6 = vld [vmem:[%s1304_s25 + $0x10] sm:$0xff]   ;;  %s1375_s9 = scalar_lea.vmem %s1634_s4, %s1122_s27 }
  0x11   : > { %1160 = vmatprep.mubr.msk.bf16.mxu0 %vm349_vm1, %v1236_v4  ;;  %1194 = vmatprep.mubr.msk.bf16.mxu1 %vm349_vm1, %v1236_v4  ;;  %v1239_v7 = vld [vmem:[%s1304_s25 + $0x18] sm:$0xff]   ;;  %v1240_v8 = vld [vmem:[%s1304_s25 + $0x20] sm:$0xff]   ;;  %v1241_v9 = vld [vmem:[%s1304_s25 + $0x28] sm:$0xff]  }
  0x12   : > { %1161 = vmatmul.mubr.msk.bf16.vlgmr.msra.gmra.mrb[0].mxu0 %vm349_vm1, %v1237_v5  ;;  %1195 = vmatmul.mubr.msk.bf16.vlgmr.msra.gmra.mrb[0].mxu1 %vm349_vm1, %v1237_v5  ;;  %v1242_v10 = vld [vmem:[%s1304_s25 + $0x30] sm:$0xff]   ;;  %v1243_v11 = vld [vmem:[%s1304_s25 + $0x38] sm:$0xff]   ;;  %v1244_v12 = vld [vmem:[%s1304_s25 + $0x40] sm:$0xff]  }
  0x13   : > { %1164 = vmatprep.mubr.msk.bf16.mxu0 %vm349_vm1, %v1238_v6  ;;  %1198 = vmatprep.mubr.msk.bf16.mxu1 %vm349_vm1, %v1238_v6  ;;  %v1245_v13 = vld [vmem:[%s1304_s25 + $0x48] sm:$0xff]   ;;  %v1246_v14 = vld [vmem:[%s1304_s25 + $0x50] sm:$0xff]   ;;  %v1247_v15 = vld [vmem:[%s1304_s25 + $0x58] sm:$0xff]  }
  0x14   : > { %v1248_v16 = vld [vmem:[%s1304_s25 + $0x60] sm:$0xff]   ;;  %v1249_v17 = vld [vmem:[%s1304_s25 + $0x68] sm:$0xff]   ;;  %v1250_v18 = vld [vmem:[%s1304_s25 + $0x70] sm:$0xff]  }
  0x15   : > { %v1251_v19 = vld [vmem:[%s1304_s25 + $0x78] sm:$0xff]   ;;  %v565_v22 = vld [vmem:[%s1359_s30 + $0x20] sm:$0xff]  ;;  %v1058_v24 = vld [vmem:[%s1359_s30 + $0x30] sm:$0xff] }
  0x16   : > { %v563_v28 = vld [vmem:[%s1359_s30] sm:$0xff]  ;;  %v1056_v30 = vld [vmem:[%s1359_s30 + $0x10] sm:$0xff]  ;;  %v566_v34 = vld [vmem:[%s1359_s30 + $0x28] sm:$0xff] }
  0x17   : > { %v1059_v36 = vld [vmem:[%s1359_s30 + $0x38] sm:$0xff]  ;;  %v564_v42 = vld [vmem:[%s1359_s30 + $0x8] sm:$0xff]  ;;  %v569_v54 = vld [vmem:[%s1359_s30 + $0x60] sm:$0xff] }
  0x18   : > { %v1057_v44 = vld [vmem:[%s1359_s30 + $0x18] sm:$0xff]  ;;  %v1062_v56 = vld [vmem:[%s1359_s30 + $0x70] sm:$0xff]  ;;  %v567_v60 = vld [vmem:[%s1359_s30 + $0x40] sm:$0xff] }
  0x19   : > { %v1060_v62 = vld [vmem:[%s1359_s30 + $0x50] sm:$0xff]  ;;  %v570_v2 = vld [vmem:[%s1359_s30 + $0x68] sm:$0xff]  ;;  %v1063_v4 = vld [vmem:[%s1359_s30 + $0x78] sm:$0xff] }
  0x1a   : > { %1165 = vmatmul.mubr.msk.bf16.gmra.mrb[4].mxu0 %vm349_vm1, %v1239_v7  ;;  %1199 = vmatmul.mubr.msk.bf16.gmra.mrb[4].mxu1 %vm349_vm1, %v1239_v7 }
  0x1b   : > { %1168 = vmatprep.mubr.msk.bf16.mxu0 %vm349_vm1, %v1240_v8  ;;  %1202 = vmatprep.mubr.msk.bf16.mxu1 %vm349_vm1, %v1240_v8 }
  0x22   : > { %1169 = vmatmul.mubr.msk.bf16.gmra.mrb[8].mxu0 %vm349_vm1, %v1241_v9  ;;  %1203 = vmatmul.mubr.msk.bf16.gmra.mrb[8].mxu1 %vm349_vm1, %v1241_v9 }
  0x23   : > { %1172 = vmatprep.mubr.msk.bf16.mxu0 %vm349_vm1, %v1242_v10  ;;  %1206 = vmatprep.mubr.msk.bf16.mxu1 %vm349_vm1, %v1242_v10  ;;  %v568_v10 = vld [vmem:[%s1359_s30 + $0x48] sm:$0xff] }
  0x2a   : > { %1173 = vmatmul.mubr.msk.bf16.gmra.mrb[12].mxu0 %vm349_vm1, %v1243_v11  ;;  %1207 = vmatmul.mubr.msk.bf16.gmra.mrb[12].mxu1 %vm349_vm1, %v1243_v11 }
  0x2b   : > { %1176 = vmatprep.mubr.msk.bf16.mxu0 %vm349_vm1, %v1244_v12  ;;  %1210 = vmatprep.mubr.msk.bf16.mxu1 %vm349_vm1, %v1244_v12  ;;  %v1061_v12 = vld [vmem:[%s1359_s30 + $0x58] sm:$0xff] }
  0x32   : > { %1177 = vmatmul.mubr.msk.bf16.gmra.mrb[16].mxu0 %vm349_vm1, %v1245_v13  ;;  %1211 = vmatmul.mubr.msk.bf16.gmra.mrb[16].mxu1 %vm349_vm1, %v1245_v13 }
  0x33   : > { %1180 = vmatprep.mubr.msk.bf16.mxu0 %vm349_vm1, %v1246_v14  ;;  %1214 = vmatprep.mubr.msk.bf16.mxu1 %vm349_vm1, %v1246_v14 }
  0x3a   : > { %1181 = vmatmul.mubr.msk.bf16.gmra.mrb[20].mxu0 %vm349_vm1, %v1247_v15  ;;  %1215 = vmatmul.mubr.msk.bf16.gmra.mrb[20].mxu1 %vm349_vm1, %v1247_v15 }
  0x3b   : > { %1184 = vmatprep.mubr.msk.bf16.mxu0 %vm349_vm1, %v1248_v16  ;;  %1218 = vmatprep.mubr.msk.bf16.mxu1 %vm349_vm1, %v1248_v16 }
  0x42   : > { %1185 = vmatmul.mubr.msk.bf16.gmra.mrb[24].mxu0 %vm349_vm1, %v1249_v17  ;;  %1219 = vmatmul.mubr.msk.bf16.gmra.mrb[24].mxu1 %vm349_vm1, %v1249_v17 }
  0x43   : > { %1188 = vmatprep.mubr.msk.bf16.mxu0 %vm349_vm1, %v1250_v18  ;;  %1222 = vmatprep.mubr.msk.bf16.mxu1 %vm349_vm1, %v1250_v18 }
  0x4a   : > { %1189 = vmatmul.mubr.msk.bf16.gmra.mrb[28].mxu0 %vm349_vm1, %v1251_v19  ;;  %1223 = vmatmul.mubr.msk.bf16.gmra.mrb[28].mxu1 %vm349_vm1, %v1251_v19 }
  0xe5   : > { %v1162_v21 = vpop.f32.mrb[0].mxu0  ;;  %v1196_v23 = vpop.f32.mrb[0].mxu1 }
  0xe6   : > { %v445_v25 = vadd.f32 %v1162_v21, %v1364_v20  ;;  %v707_v26 = vadd.f32 %v1196_v23, %v1364_v20  ;;  %v436_v27 = vpop.f32.mrb[1].mxu0  ;;  %v698_v29 = vpop.f32.mrb[1].mxu1  ;;  %v573_v23 = vld [vmem:[%s1359_s30 + $0xa0] sm:$0xff] }
  0xe7   : > { %v437_v31 = vadd.f32 %v1364_v20, %v436_v27  ;;  %v699_v32 = vadd.f32 %v1364_v20, %v698_v29  ;;  %v1163_v33 = vpop.f32.mrb[2].mxu0  ;;  %v1197_v35 = vpop.f32.mrb[2].mxu1  ;;  %v571_v29 = vld [vmem:[%s1359_s30 + $0x80] sm:$0xff] }
  0xe8   : > { %v597_v37 = vadd.f32 %v565_v22, %v445_v25  ;;  %v860_v38 = vadd.f32 %v1058_v24, %v707_v26  ;;  %v448_v39 = vadd.f32 %v1163_v33, %v1364_v20  ;;  %v710_v40 = vadd.f32 %v1197_v35, %v1364_v20  ;;  %v439_v41 = vpop.f32.mrb[3].mxu0  ;;  %v701_v43 = vpop.f32.mrb[3].mxu1  ;;  %v1066_v25 = vld [vmem:[%s1359_s30 + $0xb0] sm:$0xff]  ;;  %v574_v35 = vld [vmem:[%s1359_s30 + $0xa8] sm:$0xff] }
  0xe9   : > { %v595_v45 = vadd.f32 %v563_v28, %v437_v31  ;;  %v858_v46 = vadd.f32 %v1056_v30, %v699_v32  ;;  %v440_v47 = vadd.f32 %v1364_v20, %v439_v41  ;;  %v702_v48 = vadd.f32 %v1364_v20, %v701_v43  ;;  %v1064_v31 = vld [vmem:[%s1359_s30 + $0x90] sm:$0xff]  ;;  %v572_v43 = vld [vmem:[%s1359_s30 + $0x88] sm:$0xff] }
  0xea   : > { %629 = vst.msk [vmem:[%s1375_s9 + $0x20] sm:$0xff] %vm349_vm1, %v597_v37  ;;  %1090 = vst.msk [vmem:[%s1375_s9 + $0x30] sm:$0xff] %vm349_vm1, %v860_v38  ;;  %v598_v49 = vadd.f32 %v566_v34, %v448_v39  ;;  %v861_v50 = vadd.f32 %v1059_v36, %v710_v40  ;;  %v1067_v37 = vld [vmem:[%s1359_s30 + $0xb8] sm:$0xff] }
  0xeb   : > { %627 = vst.msk [vmem:[%s1375_s9] sm:$0xff] %vm349_vm1, %v595_v45  ;;  %1088 = vst.msk [vmem:[%s1375_s9 + $0x10] sm:$0xff] %vm349_vm1, %v858_v46  ;;  %v596_v51 = vadd.f32 %v564_v42, %v440_v47  ;;  %v859_v52 = vadd.f32 %v1057_v44, %v702_v48  ;;  %v1065_v45 = vld [vmem:[%s1359_s30 + $0x98] sm:$0xff] }
  0xec   : > { %630 = vst.msk [vmem:[%s1375_s9 + $0x28] sm:$0xff] %vm349_vm1, %v598_v49  ;;  %1091 = vst.msk [vmem:[%s1375_s9 + $0x38] sm:$0xff] %vm349_vm1, %v861_v50 }
  0xed   : > { %628 = vst.msk [vmem:[%s1375_s9 + $0x8] sm:$0xff] %vm349_vm1, %v596_v51  ;;  %1089 = vst.msk [vmem:[%s1375_s9 + $0x18] sm:$0xff] %vm349_vm1, %v859_v52  ;;  %v1166_v53 = vpop.f32.mrb[4].mxu0  ;;  %v1200_v55 = vpop.f32.mrb[4].mxu1 }
  0xee   : > { %v461_v57 = vadd.f32 %v1166_v53, %v1364_v20  ;;  %v723_v58 = vadd.f32 %v1200_v55, %v1364_v20  ;;  %v452_v59 = vpop.f32.mrb[5].mxu0  ;;  %v714_v61 = vpop.f32.mrb[5].mxu1  ;;  %v577_v55 = vld [vmem:[%s1359_s30 + $0xe0] sm:$0xff] }
  0xef   : > { %v453_v63 = vadd.f32 %v1364_v20, %v452_v59  ;;  %v715_v0 = vadd.f32 %v1364_v20, %v714_v61  ;;  %v1167_v1 = vpop.f32.mrb[6].mxu0  ;;  %v1201_v3 = vpop.f32.mrb[6].mxu1  ;;  %v575_v61 = vld [vmem:[%s1359_s30 + $0xc0] sm:$0xff] }
  0xf0   : > { %v601_v5 = vadd.f32 %v569_v54, %v461_v57  ;;  %v864_v6 = vadd.f32 %v1062_v56, %v723_v58  ;;  %v464_v7 = vadd.f32 %v1167_v1, %v1364_v20  ;;  %v726_v8 = vadd.f32 %v1201_v3, %v1364_v20  ;;  %v455_v9 = vpop.f32.mrb[7].mxu0  ;;  %v717_v11 = vpop.f32.mrb[7].mxu1  ;;  %v1070_v57 = vld [vmem:[%s1359_s30 + $0xf0] sm:$0xff]  ;;  %v578_v3 = vld [vmem:[%s1359_s30 + $0xe8] sm:$0xff] }
  0xf1   : > { %v599_v13 = vadd.f32 %v567_v60, %v453_v63  ;;  %v862_v14 = vadd.f32 %v1060_v62, %v715_v0  ;;  %v456_v15 = vadd.f32 %v1364_v20, %v455_v9  ;;  %v718_v16 = vadd.f32 %v1364_v20, %v717_v11  ;;  %v1068_v63 = vld [vmem:[%s1359_s30 + $0xd0] sm:$0xff]  ;;  %v576_v11 = vld [vmem:[%s1359_s30 + $0xc8] sm:$0xff] }
  0xf2   : > { %633 = vst.msk [vmem:[%s1375_s9 + $0x60] sm:$0xff] %vm349_vm1, %v601_v5  ;;  %1094 = vst.msk [vmem:[%s1375_s9 + $0x70] sm:$0xff] %vm349_vm1, %v864_v6  ;;  %v602_v17 = vadd.f32 %v570_v2, %v464_v7  ;;  %v865_v18 = vadd.f32 %v1063_v4, %v726_v8  ;;  %v1071_v5 = vld [vmem:[%s1359_s30 + $0xf8] sm:$0xff] }
  0xf3   : > { %631 = vst.msk [vmem:[%s1375_s9 + $0x40] sm:$0xff] %vm349_vm1, %v599_v13  ;;  %1092 = vst.msk [vmem:[%s1375_s9 + $0x50] sm:$0xff] %vm349_vm1, %v862_v14  ;;  %v600_v19 = vadd.f32 %v568_v10, %v456_v15  ;;  %v863_v21 = vadd.f32 %v1061_v12, %v718_v16  ;;  %v1069_v13 = vld [vmem:[%s1359_s30 + $0xd8] sm:$0xff] }
  0xf4   : > { %634 = vst.msk [vmem:[%s1375_s9 + $0x68] sm:$0xff] %vm349_vm1, %v602_v17  ;;  %1095 = vst.msk [vmem:[%s1375_s9 + $0x78] sm:$0xff] %vm349_vm1, %v865_v18 }
  0xf5   : > { %632 = vst.msk [vmem:[%s1375_s9 + $0x48] sm:$0xff] %vm349_vm1, %v600_v19  ;;  %1093 = vst.msk [vmem:[%s1375_s9 + $0x58] sm:$0xff] %vm349_vm1, %v863_v21  ;;  %v1170_v22 = vpop.f32.mrb[8].mxu0  ;;  %v1204_v24 = vpop.f32.mrb[8].mxu1 }
  0xf6   : > { %v477_v26 = vadd.f32 %v1170_v22, %v1364_v20  ;;  %v739_v27 = vadd.f32 %v1204_v24, %v1364_v20  ;;  %v468_v28 = vpop.f32.mrb[9].mxu0  ;;  %v730_v30 = vpop.f32.mrb[9].mxu1  ;;  %v581_v24 = vld [vmem:[%s1359_s30 + $0x120] sm:$0xff] }
  0xf7   : > { %v469_v32 = vadd.f32 %v1364_v20, %v468_v28  ;;  %v731_v33 = vadd.f32 %v1364_v20, %v730_v30  ;;  %v1171_v34 = vpop.f32.mrb[10].mxu0  ;;  %v1205_v36 = vpop.f32.mrb[10].mxu1  ;;  %v579_v30 = vld [vmem:[%s1359_s30 + $0x100] sm:$0xff] }
  0xf8   : > { %v605_v38 = vadd.f32 %v573_v23, %v477_v26  ;;  %v868_v39 = vadd.f32 %v1066_v25, %v739_v27  ;;  %v480_v40 = vadd.f32 %v1171_v34, %v1364_v20  ;;  %v742_v41 = vadd.f32 %v1205_v36, %v1364_v20  ;;  %v471_v42 = vpop.f32.mrb[11].mxu0  ;;  %v733_v44 = vpop.f32.mrb[11].mxu1  ;;  %v1074_v26 = vld [vmem:[%s1359_s30 + $0x130] sm:$0xff]  ;;  %v582_v36 = vld [vmem:[%s1359_s30 + $0x128] sm:$0xff] }
  0xf9   : > { %v603_v46 = vadd.f32 %v571_v29, %v469_v32  ;;  %v866_v47 = vadd.f32 %v1064_v31, %v731_v33  ;;  %v472_v48 = vadd.f32 %v1364_v20, %v471_v42  ;;  %v734_v49 = vadd.f32 %v1364_v20, %v733_v44  ;;  %v1072_v32 = vld [vmem:[%s1359_s30 + $0x110] sm:$0xff]  ;;  %v580_v44 = vld [vmem:[%s1359_s30 + $0x108] sm:$0xff] }
  0xfa   : > { %637 = vst.msk [vmem:[%s1375_s9 + $0xa0] sm:$0xff] %vm349_vm1, %v605_v38  ;;  %1098 = vst.msk [vmem:[%s1375_s9 + $0xb0] sm:$0xff] %vm349_vm1, %v868_v39  ;;  %v606_v50 = vadd.f32 %v574_v35, %v480_v40  ;;  %v869_v51 = vadd.f32 %v1067_v37, %v742_v41  ;;  %v1075_v38 = vld [vmem:[%s1359_s30 + $0x138] sm:$0xff] }
  0xfb   : > { %635 = vst.msk [vmem:[%s1375_s9 + $0x80] sm:$0xff] %vm349_vm1, %v603_v46  ;;  %1096 = vst.msk [vmem:[%s1375_s9 + $0x90] sm:$0xff] %vm349_vm1, %v866_v47  ;;  %v604_v52 = vadd.f32 %v572_v43, %v472_v48  ;;  %v867_v53 = vadd.f32 %v1065_v45, %v734_v49  ;;  %v1073_v46 = vld [vmem:[%s1359_s30 + $0x118] sm:$0xff] }
  0xfc   : > { %638 = vst.msk [vmem:[%s1375_s9 + $0xa8] sm:$0xff] %vm349_vm1, %v606_v50  ;;  %1099 = vst.msk [vmem:[%s1375_s9 + $0xb8] sm:$0xff] %vm349_vm1, %v869_v51 }
  0xfd   : > { %636 = vst.msk [vmem:[%s1375_s9 + $0x88] sm:$0xff] %vm349_vm1, %v604_v52  ;;  %1097 = vst.msk [vmem:[%s1375_s9 + $0x98] sm:$0xff] %vm349_vm1, %v867_v53  ;;  %v1174_v54 = vpop.f32.mrb[12].mxu0  ;;  %v1208_v56 = vpop.f32.mrb[12].mxu1 }
  0xfe   : > { %v493_v58 = vadd.f32 %v1174_v54, %v1364_v20  ;;  %v755_v59 = vadd.f32 %v1208_v56, %v1364_v20  ;;  %v484_v60 = vpop.f32.mrb[13].mxu0  ;;  %v746_v62 = vpop.f32.mrb[13].mxu1  ;;  %v585_v56 = vld [vmem:[%s1359_s30 + $0x160] sm:$0xff] }
  0xff   : > { %v485_v0 = vadd.f32 %v1364_v20, %v484_v60  ;;  %v747_v1 = vadd.f32 %v1364_v20, %v746_v62  ;;  %v1175_v2 = vpop.f32.mrb[14].mxu0  ;;  %v1209_v4 = vpop.f32.mrb[14].mxu1  ;;  %v583_v62 = vld [vmem:[%s1359_s30 + $0x140] sm:$0xff] }
 0x100   : > { %v609_v6 = vadd.f32 %v577_v55, %v493_v58  ;;  %v872_v7 = vadd.f32 %v1070_v57, %v755_v59  ;;  %v496_v8 = vadd.f32 %v1175_v2, %v1364_v20  ;;  %v758_v9 = vadd.f32 %v1209_v4, %v1364_v20  ;;  %v487_v10 = vpop.f32.mrb[15].mxu0  ;;  %v749_v12 = vpop.f32.mrb[15].mxu1  ;;  %v1078_v58 = vld [vmem:[%s1359_s30 + $0x170] sm:$0xff]  ;;  %v586_v4 = vld [vmem:[%s1359_s30 + $0x168] sm:$0xff] }
 0x101   : > { %v607_v14 = vadd.f32 %v575_v61, %v485_v0  ;;  %v870_v15 = vadd.f32 %v1068_v63, %v747_v1  ;;  %v488_v16 = vadd.f32 %v1364_v20, %v487_v10  ;;  %v750_v17 = vadd.f32 %v1364_v20, %v749_v12  ;;  %v1076_v0 = vld [vmem:[%s1359_s30 + $0x150] sm:$0xff]  ;;  %v584_v12 = vld [vmem:[%s1359_s30 + $0x148] sm:$0xff] }
 0x102   : > { %641 = vst.msk [vmem:[%s1375_s9 + $0xe0] sm:$0xff] %vm349_vm1, %v609_v6  ;;  %1102 = vst.msk [vmem:[%s1375_s9 + $0xf0] sm:$0xff] %vm349_vm1, %v872_v7  ;;  %v610_v18 = vadd.f32 %v578_v3, %v496_v8  ;;  %v873_v19 = vadd.f32 %v1071_v5, %v758_v9  ;;  %v1079_v6 = vld [vmem:[%s1359_s30 + $0x178] sm:$0xff] }
 0x103   : > { %639 = vst.msk [vmem:[%s1375_s9 + $0xc0] sm:$0xff] %vm349_vm1, %v607_v14  ;;  %1100 = vst.msk [vmem:[%s1375_s9 + $0xd0] sm:$0xff] %vm349_vm1, %v870_v15  ;;  %v608_v21 = vadd.f32 %v576_v11, %v488_v16  ;;  %v871_v22 = vadd.f32 %v1069_v13, %v750_v17  ;;  %v1077_v14 = vld [vmem:[%s1359_s30 + $0x158] sm:$0xff] }
 0x104   : > { %642 = vst.msk [vmem:[%s1375_s9 + $0xe8] sm:$0xff] %vm349_vm1, %v610_v18  ;;  %1103 = vst.msk [vmem:[%s1375_s9 + $0xf8] sm:$0xff] %vm349_vm1, %v873_v19 }
 0x105   : > { %640 = vst.msk [vmem:[%s1375_s9 + $0xc8] sm:$0xff] %vm349_vm1, %v608_v21  ;;  %1101 = vst.msk [vmem:[%s1375_s9 + $0xd8] sm:$0xff] %vm349_vm1, %v871_v22  ;;  %v1178_v23 = vpop.f32.mrb[16].mxu0  ;;  %v1212_v25 = vpop.f32.mrb[16].mxu1 }
 0x106   : > { %v509_v27 = vadd.f32 %v1178_v23, %v1364_v20  ;;  %v771_v28 = vadd.f32 %v1212_v25, %v1364_v20  ;;  %v500_v29 = vpop.f32.mrb[17].mxu0  ;;  %v762_v31 = vpop.f32.mrb[17].mxu1  ;;  %v589_v25 = vld [vmem:[%s1359_s30 + $0x1a0] sm:$0xff] }
 0x107   : > { %v501_v33 = vadd.f32 %v1364_v20, %v500_v29  ;;  %v763_v34 = vadd.f32 %v1364_v20, %v762_v31  ;;  %v1179_v35 = vpop.f32.mrb[18].mxu0  ;;  %v1213_v37 = vpop.f32.mrb[18].mxu1  ;;  %v587_v31 = vld [vmem:[%s1359_s30 + $0x180] sm:$0xff] }
 0x108   : > { %v613_v39 = vadd.f32 %v581_v24, %v509_v27  ;;  %v876_v40 = vadd.f32 %v1074_v26, %v771_v28  ;;  %v512_v41 = vadd.f32 %v1179_v35, %v1364_v20  ;;  %v774_v42 = vadd.f32 %v1213_v37, %v1364_v20  ;;  %v503_v43 = vpop.f32.mrb[19].mxu0  ;;  %v765_v45 = vpop.f32.mrb[19].mxu1  ;;  %v1082_v27 = vld [vmem:[%s1359_s30 + $0x1b0] sm:$0xff]  ;;  %v590_v37 = vld [vmem:[%s1359_s30 + $0x1a8] sm:$0xff] }
 0x109   : > { %v611_v47 = vadd.f32 %v579_v30, %v501_v33  ;;  %v874_v48 = vadd.f32 %v1072_v32, %v763_v34  ;;  %v504_v49 = vadd.f32 %v1364_v20, %v503_v43  ;;  %v766_v50 = vadd.f32 %v1364_v20, %v765_v45  ;;  %v1080_v33 = vld [vmem:[%s1359_s30 + $0x190] sm:$0xff]  ;;  %v588_v45 = vld [vmem:[%s1359_s30 + $0x188] sm:$0xff] }
 0x10a   : > { %645 = vst.msk [vmem:[%s1375_s9 + $0x120] sm:$0xff] %vm349_vm1, %v613_v39  ;;  %1106 = vst.msk [vmem:[%s1375_s9 + $0x130] sm:$0xff] %vm349_vm1, %v876_v40  ;;  %v614_v51 = vadd.f32 %v582_v36, %v512_v41  ;;  %v877_v52 = vadd.f32 %v1075_v38, %v774_v42  ;;  %v1083_v39 = vld [vmem:[%s1359_s30 + $0x1b8] sm:$0xff] }
 0x10b   : > { %643 = vst.msk [vmem:[%s1375_s9 + $0x100] sm:$0xff] %vm349_vm1, %v611_v47  ;;  %1104 = vst.msk [vmem:[%s1375_s9 + $0x110] sm:$0xff] %vm349_vm1, %v874_v48  ;;  %v612_v53 = vadd.f32 %v580_v44, %v504_v49  ;;  %v875_v54 = vadd.f32 %v1073_v46, %v766_v50  ;;  %v1081_v47 = vld [vmem:[%s1359_s30 + $0x198] sm:$0xff] }
 0x10c   : > { %646 = vst.msk [vmem:[%s1375_s9 + $0x128] sm:$0xff] %vm349_vm1, %v614_v51  ;;  %1107 = vst.msk [vmem:[%s1375_s9 + $0x138] sm:$0xff] %vm349_vm1, %v877_v52 }
 0x10d   : > { %644 = vst.msk [vmem:[%s1375_s9 + $0x108] sm:$0xff] %vm349_vm1, %v612_v53  ;;  %1105 = vst.msk [vmem:[%s1375_s9 + $0x118] sm:$0xff] %vm349_vm1, %v875_v54  ;;  %v1182_v55 = vpop.f32.mrb[20].mxu0  ;;  %v1216_v57 = vpop.f32.mrb[20].mxu1 }
 0x10e   : > { %v525_v59 = vadd.f32 %v1182_v55, %v1364_v20  ;;  %v787_v60 = vadd.f32 %v1216_v57, %v1364_v20  ;;  %v516_v61 = vpop.f32.mrb[21].mxu0  ;;  %v778_v63 = vpop.f32.mrb[21].mxu1  ;;  %v593_v57 = vld [vmem:[%s1359_s30 + $0x1e0] sm:$0xff] }
 0x10f   : > { %v517_v1 = vadd.f32 %v1364_v20, %v516_v61  ;;  %v779_v2 = vadd.f32 %v1364_v20, %v778_v63  ;;  %v1183_v3 = vpop.f32.mrb[22].mxu0  ;;  %v1217_v5 = vpop.f32.mrb[22].mxu1  ;;  %v591_v63 = vld [vmem:[%s1359_s30 + $0x1c0] sm:$0xff] }
 0x110   : > { %v617_v7 = vadd.f32 %v585_v56, %v525_v59  ;;  %v880_v8 = vadd.f32 %v1078_v58, %v787_v60  ;;  %v528_v9 = vadd.f32 %v1183_v3, %v1364_v20  ;;  %v790_v10 = vadd.f32 %v1217_v5, %v1364_v20  ;;  %v519_v11 = vpop.f32.mrb[23].mxu0  ;;  %v781_v13 = vpop.f32.mrb[23].mxu1  ;;  %v1086_v59 = vld [vmem:[%s1359_s30 + $0x1f0] sm:$0xff]  ;;  %v594_v5 = vld [vmem:[%s1359_s30 + $0x1e8] sm:$0xff] }
 0x111   : > { %v615_v15 = vadd.f32 %v583_v62, %v517_v1  ;;  %v878_v16 = vadd.f32 %v1076_v0, %v779_v2  ;;  %v520_v17 = vadd.f32 %v1364_v20, %v519_v11  ;;  %v782_v18 = vadd.f32 %v1364_v20, %v781_v13  ;;  %v1084_v1 = vld [vmem:[%s1359_s30 + $0x1d0] sm:$0xff]  ;;  %v592_v13 = vld [vmem:[%s1359_s30 + $0x1c8] sm:$0xff] }
 0x112   : > { %649 = vst.msk [vmem:[%s1375_s9 + $0x160] sm:$0xff] %vm349_vm1, %v617_v7  ;;  %1110 = vst.msk [vmem:[%s1375_s9 + $0x170] sm:$0xff] %vm349_vm1, %v880_v8  ;;  %v618_v19 = vadd.f32 %v586_v4, %v528_v9  ;;  %v881_v21 = vadd.f32 %v1079_v6, %v790_v10  ;;  %v1087_v7 = vld [vmem:[%s1359_s30 + $0x1f8] sm:$0xff] }
 0x113   : > { %647 = vst.msk [vmem:[%s1375_s9 + $0x140] sm:$0xff] %vm349_vm1, %v615_v15  ;;  %1108 = vst.msk [vmem:[%s1375_s9 + $0x150] sm:$0xff] %vm349_vm1, %v878_v16  ;;  %v616_v22 = vadd.f32 %v584_v12, %v520_v17  ;;  %v879_v23 = vadd.f32 %v1077_v14, %v782_v18  ;;  %v1085_v15 = vld [vmem:[%s1359_s30 + $0x1d8] sm:$0xff] }
 0x114   : > { %650 = vst.msk [vmem:[%s1375_s9 + $0x168] sm:$0xff] %vm349_vm1, %v618_v19  ;;  %1111 = vst.msk [vmem:[%s1375_s9 + $0x178] sm:$0xff] %vm349_vm1, %v881_v21 }
 0x115   : > { %648 = vst.msk [vmem:[%s1375_s9 + $0x148] sm:$0xff] %vm349_vm1, %v616_v22  ;;  %1109 = vst.msk [vmem:[%s1375_s9 + $0x158] sm:$0xff] %vm349_vm1, %v879_v23  ;;  %v1186_v24 = vpop.f32.mrb[24].mxu0  ;;  %v1220_v26 = vpop.f32.mrb[24].mxu1 }
 0x116   : > { %v541_v28 = vadd.f32 %v1186_v24, %v1364_v20  ;;  %v803_v29 = vadd.f32 %v1220_v26, %v1364_v20  ;;  %v532_v30 = vpop.f32.mrb[25].mxu0  ;;  %v794_v32 = vpop.f32.mrb[25].mxu1 }
 0x117   : > { %v533_v34 = vadd.f32 %v1364_v20, %v532_v30  ;;  %v795_v35 = vadd.f32 %v1364_v20, %v794_v32  ;;  %v1187_v36 = vpop.f32.mrb[26].mxu0  ;;  %v1221_v38 = vpop.f32.mrb[26].mxu1 }
 0x118   : > { %v621_v40 = vadd.f32 %v589_v25, %v541_v28  ;;  %v884_v41 = vadd.f32 %v1082_v27, %v803_v29  ;;  %v544_v42 = vadd.f32 %v1187_v36, %v1364_v20  ;;  %v806_v43 = vadd.f32 %v1221_v38, %v1364_v20  ;;  %v535_v44 = vpop.f32.mrb[27].mxu0  ;;  %v797_v46 = vpop.f32.mrb[27].mxu1 }
 0x119   : > { %v619_v48 = vadd.f32 %v587_v31, %v533_v34  ;;  %v882_v49 = vadd.f32 %v1080_v33, %v795_v35  ;;  %v536_v50 = vadd.f32 %v1364_v20, %v535_v44  ;;  %v798_v51 = vadd.f32 %v1364_v20, %v797_v46 }
 0x11a   : > { %653 = vst.msk [vmem:[%s1375_s9 + $0x1a0] sm:$0xff] %vm349_vm1, %v621_v40  ;;  %1114 = vst.msk [vmem:[%s1375_s9 + $0x1b0] sm:$0xff] %vm349_vm1, %v884_v41  ;;  %v622_v52 = vadd.f32 %v590_v37, %v544_v42  ;;  %v885_v53 = vadd.f32 %v1083_v39, %v806_v43 }
 0x11b   : > { %651 = vst.msk [vmem:[%s1375_s9 + $0x180] sm:$0xff] %vm349_vm1, %v619_v48  ;;  %1112 = vst.msk [vmem:[%s1375_s9 + $0x190] sm:$0xff] %vm349_vm1, %v882_v49  ;;  %v620_v54 = vadd.f32 %v588_v45, %v536_v50  ;;  %v883_v55 = vadd.f32 %v1081_v47, %v798_v51 }
 0x11c   : > { %654 = vst.msk [vmem:[%s1375_s9 + $0x1a8] sm:$0xff] %vm349_vm1, %v622_v52  ;;  %1115 = vst.msk [vmem:[%s1375_s9 + $0x1b8] sm:$0xff] %vm349_vm1, %v885_v53 }
 0x11d   : > { %652 = vst.msk [vmem:[%s1375_s9 + $0x188] sm:$0xff] %vm349_vm1, %v620_v54  ;;  %1113 = vst.msk [vmem:[%s1375_s9 + $0x198] sm:$0xff] %vm349_vm1, %v883_v55  ;;  %v1190_v56 = vpop.f32.mrb[28].mxu0  ;;  %v1224_v58 = vpop.f32.mrb[28].mxu1 }
 0x11e   : > { %v557_v60 = vadd.f32 %v1190_v56, %v1364_v20  ;;  %v819_v61 = vadd.f32 %v1224_v58, %v1364_v20  ;;  %v548_v62 = vpop.f32.mrb[29].mxu0  ;;  %v810_v0 = vpop.f32.mrb[29].mxu1 }
 0x11f   : > { %v549_v2 = vadd.f32 %v1364_v20, %v548_v62  ;;  %v811_v3 = vadd.f32 %v1364_v20, %v810_v0  ;;  %v1191_v4 = vpop.f32.mrb[30].mxu0  ;;  %v1225_v6 = vpop.f32.mrb[30].mxu1 }
 0x120   : > { %v625_v8 = vadd.f32 %v593_v57, %v557_v60  ;;  %v888_v9 = vadd.f32 %v1086_v59, %v819_v61  ;;  %v560_v10 = vadd.f32 %v1191_v4, %v1364_v20  ;;  %v822_v11 = vadd.f32 %v1225_v6, %v1364_v20  ;;  %v551_v12 = vpop.f32.mrb[31].mxu0  ;;  %v813_v14 = vpop.f32.mrb[31].mxu1 }
 0x121   : > { %v623_v16 = vadd.f32 %v591_v63, %v549_v2  ;;  %v886_v17 = vadd.f32 %v1084_v1, %v811_v3  ;;  %v552_v18 = vadd.f32 %v1364_v20, %v551_v12  ;;  %v814_v19 = vadd.f32 %v1364_v20, %v813_v14 }
 0x122   : > { %657 = vst.msk [vmem:[%s1375_s9 + $0x1e0] sm:$0xff] %vm349_vm1, %v625_v8  ;;  %1118 = vst.msk [vmem:[%s1375_s9 + $0x1f0] sm:$0xff] %vm349_vm1, %v888_v9  ;;  %v626_v21 = vadd.f32 %v594_v5, %v560_v10  ;;  %v889_v22 = vadd.f32 %v1087_v7, %v822_v11 }
 0x123   : > { %655 = vst.msk [vmem:[%s1375_s9 + $0x1c0] sm:$0xff] %vm349_vm1, %v623_v16  ;;  %1116 = vst.msk [vmem:[%s1375_s9 + $0x1d0] sm:$0xff] %vm349_vm1, %v886_v17  ;;  %v624_v23 = vadd.f32 %v592_v13, %v552_v18  ;;  %v887_v24 = vadd.f32 %v1085_v15, %v814_v19 }
 0x124   : > { %658 = vst.msk [vmem:[%s1375_s9 + $0x1e8] sm:$0xff] %vm349_vm1, %v626_v21  ;;  %1119 = vst.msk [vmem:[%s1375_s9 + $0x1f8] sm:$0xff] %vm349_vm1, %v889_v22 }
 0x125   : > { %656 = vst.msk [vmem:[%s1375_s9 + $0x1c8] sm:$0xff] %vm349_vm1, %v624_v23  ;;  %1117 = vst.msk [vmem:[%s1375_s9 + $0x1d8] sm:$0xff] %vm349_vm1, %v887_v24 }
 0x126 PF: > { %s14_s15 = sadd.s32 1, %s1258_s15  }
 0x127   : > { %p11_p5 = scmp.ge.s32.totalorder %s14_s15, 4  }
 0x129   :  { %13 = sbr.rel (!%p11_p5) target bundleno = 1 (0x1), region = 72 }

</bundles_post_ra>
